<compile_context>
chip_gen: v7x
topology: tpu7x:2x2x1
jax: 0.10.0
libtpu: 0.0.40
codegen_flags: <defaults>
</compile_context>

<pallas_src>
import jax
import jax.numpy as jnp
from jax import lax
from jax.experimental import pallas as pl
from jax.experimental.pallas import tpu as pltpu

EPS = 1e-5


def encoding_block_kernel(x_ref, w1_ref, g1_ref, b1_ref,
                          w2_ref, g2_ref, b2_ref,
                          wr_ref, br_ref,
                          out_ref, skip_ref):
    # Layout (channels on sublanes, length on lanes):
    #   x_ref:    (N, Cin, L)      -- PyTorch NCL, unchanged
    #   w1_ref:   (K, Cout, Cin)   -- tap-major conv1 weight
    #   w2_ref:   (K, Cout, Cout)  -- tap-major conv2 weight
    #   wr_ref:   (Cout, Cin)      -- 1x1 residual conv weight
    #   g*/b*/br: (Cout, 1)        -- BN gamma/beta, residual bias
    #   out_ref:  (N, Cout, L//2)  -- pooled output
    #   skip_ref: (N, Cout, L)     -- skip connection (pre-pool)
    N, Cin, L = x_ref.shape
    K = w1_ref.shape[0]
    pad = (K - 1) // 2          # 'same' padding (padding=1 for k=3)
    NL = N * L
    inv_cnt = 1.0 / float(NL)

    # Fold the batch onto the lane axis: (Cin, N*L).
    xf = jnp.concatenate([x_ref[n, :, :] for n in range(N)], axis=1)

    # Per-sample position along the length axis; used to zero the conv halo at
    # each sample boundary instead of materializing a zero-padded copy.
    pos = jnp.concatenate(
        [lax.broadcasted_iota(jnp.int32, (1, L), 1) for _ in range(N)], axis=1)

    def shifted(xin, o):
        # xin: (C, N*L) -> xin shifted by o along length, zero outside each sample.
        if o == 0:
            return xin
        c = xin.shape[0]
        z = jnp.zeros((c, abs(o)), jnp.float32)
        if o < 0:
            sh = jnp.concatenate([z, xin[:, :NL + o]], axis=1)
            valid = pos >= (-o)
        else:
            sh = jnp.concatenate([xin[:, o:], z], axis=1)
            valid = pos < (L - o)
        return jnp.where(valid, sh, 0.0)

    def conv_same(xin, w_ref_):
        # xin: (C_in_, N*L), w_ref_: (K, C_out_, C_in_) -> (C_out_, N*L)
        y = None
        for t in range(K):                      # static, unrolled taps
            term = jnp.dot(w_ref_[t], shifted(xin, t - pad),
                           preferred_element_type=jnp.float32)
            y = term if y is None else y + term
        return y

    def bn_relu(y, g_ref, b_ref):
        # y: (C, N*L); BatchNorm over the flattened (N*L) lane axis + ReLU.
        mu = jnp.sum(y, axis=1, keepdims=True) * inv_cnt          # (C, 1)
        d = y - mu
        var = jnp.sum(d * d, axis=1, keepdims=True) * inv_cnt     # biased var
        scale = g_ref[...] * lax.rsqrt(var + EPS)                 # (C, 1)
        shift = b_ref[...] - mu * scale                           # (C, 1)
        return jnp.maximum(y * scale + shift, 0.0)

    h1 = bn_relu(conv_same(xf, w1_ref), g1_ref, b1_ref)           # (Cout, N*L)
    h2 = bn_relu(conv_same(h1, w2_ref), g2_ref, b2_ref)           # (Cout, N*L)

    # Residual 1x1 conv (with bias), folded over the whole batch.
    conn = jnp.dot(wr_ref[...], xf,
                   preferred_element_type=jnp.float32) + br_ref[...]
    s = h2 + conn                                                 # (Cout, N*L)

    # MaxPool1d(kernel_size=2, stride=2): even/odd lane selection via two 0/1
    # selection matmuls, then a single maximum (pairs never cross a sample
    # boundary because L is even).
    # TODO(synk): for large L, replace the selection matmuls with strided
    # loads inside an L-tiled grid to avoid the O(L^2) selection cost.
    NLh = NL // 2
    rows = lax.broadcasted_iota(jnp.int32, (NL, NLh), 0)
    cols = lax.broadcasted_iota(jnp.int32, (NL, NLh), 1)
    e_even = (rows == 2 * cols).astype(jnp.float32)
    e_odd = (rows == 2 * cols + 1).astype(jnp.float32)
    pooled = jnp.maximum(
        jnp.dot(s, e_even, preferred_element_type=jnp.float32),
        jnp.dot(s, e_odd, preferred_element_type=jnp.float32))    # (Cout, N*L/2)

    Lh = L // 2
    for n in range(N):                          # one unmasked store per output
        skip_ref[n, :, :] = s[:, n * L:(n + 1) * L].astype(skip_ref.dtype)
        out_ref[n, :, :] = pooled[:, n * Lh:(n + 1) * Lh].astype(out_ref.dtype)


def encoding_block_forward(x_ncl, params):
    """x_ncl: (N, Cin, L) PyTorch layout. Returns (pooled (N,Cout,L//2), skip (N,Cout,L))."""
    N, Cin, L = x_ncl.shape
    Cout, _, K = params["w1"].shape

    # Only the (tiny) weights are re-laid-out; activations stay in NCL.
    w1 = jnp.transpose(params["w1"], (2, 0, 1)).astype(jnp.float32)   # (K, Cout, Cin)
    w2 = jnp.transpose(params["w2"], (2, 0, 1)).astype(jnp.float32)   # (K, Cout, Cout)
    wr = params["wr"][:, :, 0].astype(jnp.float32)                    # (Cout, Cin)
    g1 = params["g1"].reshape(Cout, 1).astype(jnp.float32)
    b1 = params["b1"].reshape(Cout, 1).astype(jnp.float32)
    g2 = params["g2"].reshape(Cout, 1).astype(jnp.float32)
    b2 = params["b2"].reshape(Cout, 1).astype(jnp.float32)
    br = params["br"].reshape(Cout, 1).astype(jnp.float32)

    vmem = pl.BlockSpec(memory_space=pltpu.MemorySpace.VMEM)
    # TODO(synk): training-mode BatchNorm needs global (N, L) statistics, so the
    # whole activation stays resident in VMEM here; an L-tiled grid (for very
    # long sequences) would need a two-pass stats-then-normalize formulation.
    pooled, skip = pl.pallas_call(
        encoding_block_kernel,
        out_shape=(jax.ShapeDtypeStruct((N, Cout, L // 2), jnp.float32),
                   jax.ShapeDtypeStruct((N, Cout, L), jnp.float32)),
        in_specs=[vmem] * 9,
        out_specs=(vmem, vmem),
    )(x_ncl.astype(jnp.float32), w1, g1, b1, w2, g2, b2, wr, br)
    return pooled, skip


def reference_forward(x, p):
    """Pure-JAX reference in PyTorch NCL layout (for verification)."""
    def conv1d(x, w, b, padding):
        out = jax.lax.conv_general_dilated(
            x, w, window_strides=(1,), padding=[(padding, padding)],
            dimension_numbers=("NCH", "OIH", "NCH"))
        if b is not None:
            out = out + b[None, :, None]
        return out

    def bn(x, g, b):
        mu = jnp.mean(x, axis=(0, 2), keepdims=True)
        var = jnp.mean((x - mu) ** 2, axis=(0, 2), keepdims=True)
        return (x - mu) / jnp.sqrt(var + EPS) * g[None, :, None] + b[None, :, None]

    conn = conv1d(x, p["wr"], p["br"], padding=0)
    h = jax.nn.relu(bn(conv1d(x, p["w1"], None, 1), p["g1"], p["b1"]))
    h = jax.nn.relu(bn(conv1d(h, p["w2"], None, 1), p["g2"], p["b2"]))
    s = h + conn
    pooled = jnp.maximum(s[:, :, 0::2], s[:, :, 1::2])
    return pooled, s


if __name__ == "__main__":
    N, Cin, Cout, L, K = 2, 4, 8, 16, 3

    key = jax.random.PRNGKey(0)
    keys = jax.random.split(key, 8)
    params = {
        "w1": 0.2 * jax.random.normal(keys[0], (Cout, Cin, K), jnp.float32),
        "g1": 1.0 + 0.1 * jax.random.normal(keys[1], (Cout,), jnp.float32),
        "b1": 0.1 * jax.random.normal(keys[2], (Cout,), jnp.float32),
        "w2": 0.2 * jax.random.normal(keys[3], (Cout, Cout, K), jnp.float32),
        "g2": 1.0 + 0.1 * jax.random.normal(keys[4], (Cout,), jnp.float32),
        "b2": 0.1 * jax.random.normal(keys[5], (Cout,), jnp.float32),
        "wr": 0.2 * jax.random.normal(keys[6], (Cout, Cin, 1), jnp.float32),
        "br": 0.1 * jax.random.normal(keys[7], (Cout,), jnp.float32),
    }
    x = jax.random.normal(jax.random.PRNGKey(42), (N, Cin, L), jnp.float32)

    pooled, skip = encoding_block_forward(x, params)
    jax.block_until_ready((pooled, skip))

    ref_pooled, ref_skip = reference_forward(x, params)
    assert pooled.shape == (N, Cout, L // 2) and skip.shape == (N, Cout, L)
    assert jnp.allclose(pooled, ref_pooled, atol=1e-4, rtol=1e-4)
    assert jnp.allclose(skip, ref_skip, atol=1e-4, rtol=1e-4)

    # TODO(synk): dropout (p=0 in this config) is an identity and is omitted.
    print("KERNEL_OK")
</pallas_src>

<mosaic_0001>
module attributes {stable_mosaic.version = 11 : i64} {
  func.func @encoding_block_kernel(%arg0: memref<2x4x16xf32, #tpu.memory_space<vmem>>, %arg1: memref<3x8x4xf32, #tpu.memory_space<vmem>>, %arg2: memref<8x1xf32, #tpu.memory_space<vmem>>, %arg3: memref<8x1xf32, #tpu.memory_space<vmem>>, %arg4: memref<3x8x8xf32, #tpu.memory_space<vmem>>, %arg5: memref<8x1xf32, #tpu.memory_space<vmem>>, %arg6: memref<8x1xf32, #tpu.memory_space<vmem>>, %arg7: memref<8x4xf32, #tpu.memory_space<vmem>>, %arg8: memref<8x1xf32, #tpu.memory_space<vmem>>, %arg9: memref<2x8x8xf32, #tpu.memory_space<vmem>>, %arg10: memref<2x8x16xf32, #tpu.memory_space<vmem>>) attributes {dimension_semantics = [], scalar_prefetch = 0 : i64, scratch_operands = 0 : i64, tpu.core_type = #tpu.core_type<tc>} {
    %c0 = arith.constant 0 : index
    %c0_0 = arith.constant 0 : index
    %c0_1 = arith.constant 0 : index
    %0 = vector.load %arg0[%c0, %c0_0, %c0_1] : memref<2x4x16xf32, #tpu.memory_space<vmem>>, vector<1x4x16xf32>
    %1 = vector.shape_cast %0 : vector<1x4x16xf32> to vector<4x16xf32>
    %c1 = arith.constant 1 : index
    %c0_2 = arith.constant 0 : index
    %c0_3 = arith.constant 0 : index
    %2 = vector.load %arg0[%c1, %c0_2, %c0_3] : memref<2x4x16xf32, #tpu.memory_space<vmem>>, vector<1x4x16xf32>
    %3 = vector.shape_cast %2 : vector<1x4x16xf32> to vector<4x16xf32>
    %4 = tpu.concatenate %1, %3 in 1 : vector<4x16xf32>, vector<4x16xf32> -> vector<4x32xf32>
    %5 = tpu.iota {dimensions = array<i32: 1>} : vector<1x16xi32>
    %6 = tpu.iota {dimensions = array<i32: 1>} : vector<1x16xi32>
    %7 = tpu.concatenate %5, %6 in 1 : vector<1x16xi32>, vector<1x16xi32> -> vector<1x32xi32>
    %c0_4 = arith.constant 0 : index
    %c0_5 = arith.constant 0 : index
    %c0_6 = arith.constant 0 : index
    %8 = vector.load %arg1[%c0_4, %c0_5, %c0_6] : memref<3x8x4xf32, #tpu.memory_space<vmem>>, vector<1x8x4xf32>
    %9 = vector.shape_cast %8 : vector<1x8x4xf32> to vector<8x4xf32>
    %cst = arith.constant 0.000000e+00 : f32
    %10 = vector.broadcast %cst : f32 to vector<4x1xf32>
    %11 = vector.extract_strided_slice %4 {offsets = [0, 0], sizes = [4, 31], strides = [1, 1]} : vector<4x32xf32> to vector<4x31xf32>
    %12 = tpu.concatenate %10, %11 in 1 : vector<4x1xf32>, vector<4x31xf32> -> vector<4x32xf32>
    %c1_i32 = arith.constant 1 : i32
    %13 = vector.broadcast %c1_i32 : i32 to vector<1x32xi32>
    %14 = arith.cmpi sge, %7, %13 : vector<1x32xi32>
    %cst_7 = arith.constant 0.000000e+00 : f32
    %15 = vector.shape_cast %14 : vector<1x32xi1> to vector<1x32xi1>
    %16 = vector.broadcast %15 : vector<1x32xi1> to vector<4x32xi1>
    %17 = vector.broadcast %cst_7 : f32 to vector<4x32xf32>
    %18 = arith.select %16, %12, %17 : vector<4x32xi1>, vector<4x32xf32>
    %cst_8 = arith.constant dense<0.000000e+00> : vector<8x32xf32>
    %19 = tpu.matmul %9, %18, %cst_8 {dimension_numbers = #tpu.dot_dimension_numbers<[1], [0], [0], [1], [0, 0, 1, 1], [], []>} : vector<8x4xf32>, vector<4x32xf32>, vector<8x32xf32> -> vector<8x32xf32>
    %c1_9 = arith.constant 1 : index
    %c0_10 = arith.constant 0 : index
    %c0_11 = arith.constant 0 : index
    %20 = vector.load %arg1[%c1_9, %c0_10, %c0_11] : memref<3x8x4xf32, #tpu.memory_space<vmem>>, vector<1x8x4xf32>
    %21 = vector.shape_cast %20 : vector<1x8x4xf32> to vector<8x4xf32>
    %cst_12 = arith.constant dense<0.000000e+00> : vector<8x32xf32>
    %22 = tpu.matmul %21, %4, %cst_12 {dimension_numbers = #tpu.dot_dimension_numbers<[1], [0], [0], [1], [0, 0, 1, 1], [], []>} : vector<8x4xf32>, vector<4x32xf32>, vector<8x32xf32> -> vector<8x32xf32>
    %23 = arith.addf %19, %22 : vector<8x32xf32>
    %c2 = arith.constant 2 : index
    %c0_13 = arith.constant 0 : index
    %c0_14 = arith.constant 0 : index
    %24 = vector.load %arg1[%c2, %c0_13, %c0_14] : memref<3x8x4xf32, #tpu.memory_space<vmem>>, vector<1x8x4xf32>
    %25 = vector.shape_cast %24 : vector<1x8x4xf32> to vector<8x4xf32>
    %cst_15 = arith.constant 0.000000e+00 : f32
    %26 = vector.broadcast %cst_15 : f32 to vector<4x1xf32>
    %27 = vector.extract_strided_slice %4 {offsets = [0, 1], sizes = [4, 31], strides = [1, 1]} : vector<4x32xf32> to vector<4x31xf32>
    %28 = tpu.concatenate %27, %26 in 1 : vector<4x31xf32>, vector<4x1xf32> -> vector<4x32xf32>
    %c15_i32 = arith.constant 15 : i32
    %29 = vector.broadcast %c15_i32 : i32 to vector<1x32xi32>
    %30 = arith.cmpi slt, %7, %29 : vector<1x32xi32>
    %cst_16 = arith.constant 0.000000e+00 : f32
    %31 = vector.shape_cast %30 : vector<1x32xi1> to vector<1x32xi1>
    %32 = vector.broadcast %31 : vector<1x32xi1> to vector<4x32xi1>
    %33 = vector.broadcast %cst_16 : f32 to vector<4x32xf32>
    %34 = arith.select %32, %28, %33 : vector<4x32xi1>, vector<4x32xf32>
    %cst_17 = arith.constant dense<0.000000e+00> : vector<8x32xf32>
    %35 = tpu.matmul %25, %34, %cst_17 {dimension_numbers = #tpu.dot_dimension_numbers<[1], [0], [0], [1], [0, 0, 1, 1], [], []>} : vector<8x4xf32>, vector<4x32xf32>, vector<8x32xf32> -> vector<8x32xf32>
    %36 = arith.addf %23, %35 : vector<8x32xf32>
    %cst_18 = arith.constant dense<0.000000e+00> : vector<8xf32>
    %37 = vector.multi_reduction <add>, %36, %cst_18 [1] : vector<8x32xf32> to vector<8xf32>
    %38 = vector.shape_cast %37 : vector<8xf32> to vector<8x1xf32>
    %cst_19 = arith.constant 3.125000e-02 : f32
    %39 = vector.broadcast %cst_19 : f32 to vector<8x1xf32>
    %40 = arith.mulf %38, %39 : vector<8x1xf32>
    %41 = vector.broadcast %40 : vector<8x1xf32> to vector<8x32xf32>
    %42 = arith.subf %36, %41 : vector<8x32xf32>
    %43 = arith.mulf %42, %42 : vector<8x32xf32>
    %cst_20 = arith.constant dense<0.000000e+00> : vector<8xf32>
    %44 = vector.multi_reduction <add>, %43, %cst_20 [1] : vector<8x32xf32> to vector<8xf32>
    %45 = vector.shape_cast %44 : vector<8xf32> to vector<8x1xf32>
    %cst_21 = arith.constant 3.125000e-02 : f32
    %46 = vector.broadcast %cst_21 : f32 to vector<8x1xf32>
    %47 = arith.mulf %45, %46 : vector<8x1xf32>
    %c0_22 = arith.constant 0 : index
    %c0_23 = arith.constant 0 : index
    %48 = vector.load %arg2[%c0_22, %c0_23] : memref<8x1xf32, #tpu.memory_space<vmem>>, vector<8x1xf32>
    %cst_24 = arith.constant 9.99999974E-6 : f32
    %49 = vector.broadcast %cst_24 : f32 to vector<8x1xf32>
    %50 = arith.addf %47, %49 : vector<8x1xf32>
    %51 = math.rsqrt %50 : vector<8x1xf32>
    %52 = arith.mulf %48, %51 : vector<8x1xf32>
    %c0_25 = arith.constant 0 : index
    %c0_26 = arith.constant 0 : index
    %53 = vector.load %arg3[%c0_25, %c0_26] : memref<8x1xf32, #tpu.memory_space<vmem>>, vector<8x1xf32>
    %54 = arith.mulf %40, %52 : vector<8x1xf32>
    %55 = arith.subf %53, %54 : vector<8x1xf32>
    %56 = vector.broadcast %52 : vector<8x1xf32> to vector<8x32xf32>
    %57 = arith.mulf %36, %56 : vector<8x32xf32>
    %58 = vector.broadcast %55 : vector<8x1xf32> to vector<8x32xf32>
    %59 = arith.addf %57, %58 : vector<8x32xf32>
    %cst_27 = arith.constant 0.000000e+00 : f32
    %60 = vector.broadcast %cst_27 : f32 to vector<8x32xf32>
    %61 = arith.maximumf %59, %60 : vector<8x32xf32>
    %c0_28 = arith.constant 0 : index
    %c0_29 = arith.constant 0 : index
    %c0_30 = arith.constant 0 : index
    %62 = vector.load %arg4[%c0_28, %c0_29, %c0_30] : memref<3x8x8xf32, #tpu.memory_space<vmem>>, vector<1x8x8xf32>
    %63 = vector.shape_cast %62 : vector<1x8x8xf32> to vector<8x8xf32>
    %cst_31 = arith.constant 0.000000e+00 : f32
    %64 = vector.broadcast %cst_31 : f32 to vector<8x1xf32>
    %65 = vector.extract_strided_slice %61 {offsets = [0, 0], sizes = [8, 31], strides = [1, 1]} : vector<8x32xf32> to vector<8x31xf32>
    %66 = tpu.concatenate %64, %65 in 1 : vector<8x1xf32>, vector<8x31xf32> -> vector<8x32xf32>
    %c1_i32_32 = arith.constant 1 : i32
    %67 = vector.broadcast %c1_i32_32 : i32 to vector<1x32xi32>
    %68 = arith.cmpi sge, %7, %67 : vector<1x32xi32>
    %cst_33 = arith.constant 0.000000e+00 : f32
    %69 = vector.shape_cast %68 : vector<1x32xi1> to vector<1x32xi1>
    %70 = vector.broadcast %69 : vector<1x32xi1> to vector<8x32xi1>
    %71 = vector.broadcast %cst_33 : f32 to vector<8x32xf32>
    %72 = arith.select %70, %66, %71 : vector<8x32xi1>, vector<8x32xf32>
    %cst_34 = arith.constant dense<0.000000e+00> : vector<8x32xf32>
    %73 = tpu.matmul %63, %72, %cst_34 {dimension_numbers = #tpu.dot_dimension_numbers<[1], [0], [0], [1], [0, 0, 1, 1], [], []>} : vector<8x8xf32>, vector<8x32xf32>, vector<8x32xf32> -> vector<8x32xf32>
    %c1_35 = arith.constant 1 : index
    %c0_36 = arith.constant 0 : index
    %c0_37 = arith.constant 0 : index
    %74 = vector.load %arg4[%c1_35, %c0_36, %c0_37] : memref<3x8x8xf32, #tpu.memory_space<vmem>>, vector<1x8x8xf32>
    %75 = vector.shape_cast %74 : vector<1x8x8xf32> to vector<8x8xf32>
    %cst_38 = arith.constant dense<0.000000e+00> : vector<8x32xf32>
    %76 = tpu.matmul %75, %61, %cst_38 {dimension_numbers = #tpu.dot_dimension_numbers<[1], [0], [0], [1], [0, 0, 1, 1], [], []>} : vector<8x8xf32>, vector<8x32xf32>, vector<8x32xf32> -> vector<8x32xf32>
    %77 = arith.addf %73, %76 : vector<8x32xf32>
    %c2_39 = arith.constant 2 : index
    %c0_40 = arith.constant 0 : index
    %c0_41 = arith.constant 0 : index
    %78 = vector.load %arg4[%c2_39, %c0_40, %c0_41] : memref<3x8x8xf32, #tpu.memory_space<vmem>>, vector<1x8x8xf32>
    %79 = vector.shape_cast %78 : vector<1x8x8xf32> to vector<8x8xf32>
    %cst_42 = arith.constant 0.000000e+00 : f32
    %80 = vector.broadcast %cst_42 : f32 to vector<8x1xf32>
    %81 = vector.extract_strided_slice %61 {offsets = [0, 1], sizes = [8, 31], strides = [1, 1]} : vector<8x32xf32> to vector<8x31xf32>
    %82 = tpu.concatenate %81, %80 in 1 : vector<8x31xf32>, vector<8x1xf32> -> vector<8x32xf32>
    %c15_i32_43 = arith.constant 15 : i32
    %83 = vector.broadcast %c15_i32_43 : i32 to vector<1x32xi32>
    %84 = arith.cmpi slt, %7, %83 : vector<1x32xi32>
    %cst_44 = arith.constant 0.000000e+00 : f32
    %85 = vector.shape_cast %84 : vector<1x32xi1> to vector<1x32xi1>
    %86 = vector.broadcast %85 : vector<1x32xi1> to vector<8x32xi1>
    %87 = vector.broadcast %cst_44 : f32 to vector<8x32xf32>
    %88 = arith.select %86, %82, %87 : vector<8x32xi1>, vector<8x32xf32>
    %cst_45 = arith.constant dense<0.000000e+00> : vector<8x32xf32>
    %89 = tpu.matmul %79, %88, %cst_45 {dimension_numbers = #tpu.dot_dimension_numbers<[1], [0], [0], [1], [0, 0, 1, 1], [], []>} : vector<8x8xf32>, vector<8x32xf32>, vector<8x32xf32> -> vector<8x32xf32>
    %90 = arith.addf %77, %89 : vector<8x32xf32>
    %cst_46 = arith.constant dense<0.000000e+00> : vector<8xf32>
    %91 = vector.multi_reduction <add>, %90, %cst_46 [1] : vector<8x32xf32> to vector<8xf32>
    %92 = vector.shape_cast %91 : vector<8xf32> to vector<8x1xf32>
    %cst_47 = arith.constant 3.125000e-02 : f32
    %93 = vector.broadcast %cst_47 : f32 to vector<8x1xf32>
    %94 = arith.mulf %92, %93 : vector<8x1xf32>
    %95 = vector.broadcast %94 : vector<8x1xf32> to vector<8x32xf32>
    %96 = arith.subf %90, %95 : vector<8x32xf32>
    %97 = arith.mulf %96, %96 : vector<8x32xf32>
    %cst_48 = arith.constant dense<0.000000e+00> : vector<8xf32>
    %98 = vector.multi_reduction <add>, %97, %cst_48 [1] : vector<8x32xf32> to vector<8xf32>
    %99 = vector.shape_cast %98 : vector<8xf32> to vector<8x1xf32>
    %cst_49 = arith.constant 3.125000e-02 : f32
    %100 = vector.broadcast %cst_49 : f32 to vector<8x1xf32>
    %101 = arith.mulf %99, %100 : vector<8x1xf32>
    %c0_50 = arith.constant 0 : index
    %c0_51 = arith.constant 0 : index
    %102 = vector.load %arg5[%c0_50, %c0_51] : memref<8x1xf32, #tpu.memory_space<vmem>>, vector<8x1xf32>
    %cst_52 = arith.constant 9.99999974E-6 : f32
    %103 = vector.broadcast %cst_52 : f32 to vector<8x1xf32>
    %104 = arith.addf %101, %103 : vector<8x1xf32>
    %105 = math.rsqrt %104 : vector<8x1xf32>
    %106 = arith.mulf %102, %105 : vector<8x1xf32>
    %c0_53 = arith.constant 0 : index
    %c0_54 = arith.constant 0 : index
    %107 = vector.load %arg6[%c0_53, %c0_54] : memref<8x1xf32, #tpu.memory_space<vmem>>, vector<8x1xf32>
    %108 = arith.mulf %94, %106 : vector<8x1xf32>
    %109 = arith.subf %107, %108 : vector<8x1xf32>
    %110 = vector.broadcast %106 : vector<8x1xf32> to vector<8x32xf32>
    %111 = arith.mulf %90, %110 : vector<8x32xf32>
    %112 = vector.broadcast %109 : vector<8x1xf32> to vector<8x32xf32>
    %113 = arith.addf %111, %112 : vector<8x32xf32>
    %cst_55 = arith.constant 0.000000e+00 : f32
    %114 = vector.broadcast %cst_55 : f32 to vector<8x32xf32>
    %115 = arith.maximumf %113, %114 : vector<8x32xf32>
    %c0_56 = arith.constant 0 : index
    %c0_57 = arith.constant 0 : index
    %116 = vector.load %arg7[%c0_56, %c0_57] : memref<8x4xf32, #tpu.memory_space<vmem>>, vector<8x4xf32>
    %cst_58 = arith.constant dense<0.000000e+00> : vector<8x32xf32>
    %117 = tpu.matmul %116, %4, %cst_58 {dimension_numbers = #tpu.dot_dimension_numbers<[1], [0], [0], [1], [0, 0, 1, 1], [], []>} : vector<8x4xf32>, vector<4x32xf32>, vector<8x32xf32> -> vector<8x32xf32>
    %c0_59 = arith.constant 0 : index
    %c0_60 = arith.constant 0 : index
    %118 = vector.load %arg8[%c0_59, %c0_60] : memref<8x1xf32, #tpu.memory_space<vmem>>, vector<8x1xf32>
    %119 = vector.broadcast %118 : vector<8x1xf32> to vector<8x32xf32>
    %120 = arith.addf %117, %119 : vector<8x32xf32>
    %121 = arith.addf %115, %120 : vector<8x32xf32>
    %122 = tpu.iota {dimensions = array<i32: 0>} : vector<32x16xi32>
    %123 = tpu.iota {dimensions = array<i32: 1>} : vector<32x16xi32>
    %c2_i32 = arith.constant 2 : i32
    %124 = vector.broadcast %c2_i32 : i32 to vector<32x16xi32>
    %125 = arith.muli %124, %123 : vector<32x16xi32>
    %126 = arith.cmpi eq, %122, %125 : vector<32x16xi32>
    %127 = arith.extui %126 : vector<32x16xi1> to vector<32x16xi32>
    %128 = arith.sitofp %127 : vector<32x16xi32> to vector<32x16xf32>
    %c2_i32_61 = arith.constant 2 : i32
    %129 = vector.broadcast %c2_i32_61 : i32 to vector<32x16xi32>
    %130 = arith.muli %129, %123 : vector<32x16xi32>
    %c1_i32_62 = arith.constant 1 : i32
    %131 = vector.broadcast %c1_i32_62 : i32 to vector<32x16xi32>
    %132 = arith.addi %130, %131 : vector<32x16xi32>
    %133 = arith.cmpi eq, %122, %132 : vector<32x16xi32>
    %134 = arith.extui %133 : vector<32x16xi1> to vector<32x16xi32>
    %135 = arith.sitofp %134 : vector<32x16xi32> to vector<32x16xf32>
    %cst_63 = arith.constant dense<0.000000e+00> : vector<8x16xf32>
    %136 = tpu.matmul %121, %128, %cst_63 {dimension_numbers = #tpu.dot_dimension_numbers<[1], [0], [0], [1], [0, 0, 1, 1], [], []>} : vector<8x32xf32>, vector<32x16xf32>, vector<8x16xf32> -> vector<8x16xf32>
    %cst_64 = arith.constant dense<0.000000e+00> : vector<8x16xf32>
    %137 = tpu.matmul %121, %135, %cst_64 {dimension_numbers = #tpu.dot_dimension_numbers<[1], [0], [0], [1], [0, 0, 1, 1], [], []>} : vector<8x32xf32>, vector<32x16xf32>, vector<8x16xf32> -> vector<8x16xf32>
    %138 = arith.maximumf %136, %137 : vector<8x16xf32>
    %139 = vector.extract_strided_slice %121 {offsets = [0, 0], sizes = [8, 16], strides = [1, 1]} : vector<8x32xf32> to vector<8x16xf32>
    %c0_65 = arith.constant 0 : index
    %c0_66 = arith.constant 0 : index
    %c0_67 = arith.constant 0 : index
    %140 = vector.load %arg10[%c0_65, %c0_66, %c0_67] : memref<2x8x16xf32, #tpu.memory_space<vmem>>, vector<1x8x16xf32>
    %141 = vector.shape_cast %140 : vector<1x8x16xf32> to vector<8x16xf32>
    %142 = vector.shape_cast %139 : vector<8x16xf32> to vector<1x8x16xf32>
    tpu.vector_store %arg10[%c0_65, %c0_66, %c0_67], %142 {strides = array<i32>} : memref<2x8x16xf32, #tpu.memory_space<vmem>>, vector<1x8x16xf32>,
    %143 = vector.extract_strided_slice %138 {offsets = [0, 0], sizes = [8, 8], strides = [1, 1]} : vector<8x16xf32> to vector<8x8xf32>
    %c0_68 = arith.constant 0 : index
    %c0_69 = arith.constant 0 : index
    %c0_70 = arith.constant 0 : index
    %144 = vector.load %arg9[%c0_68, %c0_69, %c0_70] : memref<2x8x8xf32, #tpu.memory_space<vmem>>, vector<1x8x8xf32>
    %145 = vector.shape_cast %144 : vector<1x8x8xf32> to vector<8x8xf32>
    %146 = vector.shape_cast %143 : vector<8x8xf32> to vector<1x8x8xf32>
    tpu.vector_store %arg9[%c0_68, %c0_69, %c0_70], %146 {strides = array<i32>} : memref<2x8x8xf32, #tpu.memory_space<vmem>>, vector<1x8x8xf32>,
    %147 = vector.extract_strided_slice %121 {offsets = [0, 16], sizes = [8, 16], strides = [1, 1]} : vector<8x32xf32> to vector<8x16xf32>
    %c1_71 = arith.constant 1 : index
    %c0_72 = arith.constant 0 : index
    %c0_73 = arith.constant 0 : index
    %148 = vector.load %arg10[%c1_71, %c0_72, %c0_73] : memref<2x8x16xf32, #tpu.memory_space<vmem>>, vector<1x8x16xf32>
    %149 = vector.shape_cast %148 : vector<1x8x16xf32> to vector<8x16xf32>
    %150 = vector.shape_cast %147 : vector<8x16xf32> to vector<1x8x16xf32>
    tpu.vector_store %arg10[%c1_71, %c0_72, %c0_73], %150 {strides = array<i32>} : memref<2x8x16xf32, #tpu.memory_space<vmem>>, vector<1x8x16xf32>,
    %151 = vector.extract_strided_slice %138 {offsets = [0, 8], sizes = [8, 8], strides = [1, 1]} : vector<8x16xf32> to vector<8x8xf32>
    %c1_74 = arith.constant 1 : index
    %c0_75 = arith.constant 0 : index
    %c0_76 = arith.constant 0 : index
    %152 = vector.load %arg9[%c1_74, %c0_75, %c0_76] : memref<2x8x8xf32, #tpu.memory_space<vmem>>, vector<1x8x8xf32>
    %153 = vector.shape_cast %152 : vector<1x8x8xf32> to vector<8x8xf32>
    %154 = vector.shape_cast %151 : vector<8x8xf32> to vector<1x8x8xf32>
    tpu.vector_store %arg9[%c1_74, %c0_75, %c0_76], %154 {strides = array<i32>} : memref<2x8x8xf32, #tpu.memory_space<vmem>>, vector<1x8x8xf32>,
    return
  }
}

</mosaic_0001>

<bundles_post_ra>
// kernel: tpu_custom_call.1
= control target key start
LH: loop header
LB: loop body
LE: loop exit
PB: predicated region body
PF: predicated region fallthrough
CT: control target
= control target key end

     0   :  { %16 = vsyncpa [#allocation3], 0  ;;  %v45_v1 = vlaneseq  ;;  %s1116_s15 = smov 16   ;;  %v1117_v3 = vmov 0.0   ;;  %vm1118_vm0 = vmmov 0   ;;  %v1119_v4 = vmov 0   ;;  %s1340_s0 = inlined_call_operand.vmem [shape: f32[2,4,16], index: 0, kind: input, shape index: {}]   ;;  %s1341_s1 = inlined_call_operand.vmem [shape: f32[3,8,4], index: 1, kind: input, shape index: {}]   ;;  %s1342_s2 = inlined_call_operand.vmem [shape: f32[8,1], index: 2, kind: input, shape index: {}]   ;;  %s1343_s3 = inlined_call_operand.vmem [shape: f32[8,1], index: 3, kind: input, shape index: {}]   ;;  %s1344_s4 = inlined_call_operand.vmem [shape: f32[3,8,8], index: 4, kind: input, shape index: {}]   ;;  %s1345_s5 = inlined_call_operand.vmem [shape: f32[8,1], index: 5, kind: input, shape index: {}]   ;;  %s1346_s6 = inlined_call_operand.vmem [shape: f32[8,1], index: 6, kind: input, shape index: {}]   ;;  %s1347_s7 = inlined_call_operand.vmem [shape: f32[8,4], index: 7, kind: input, shape index: {}]   ;;  %s1348_s8 = inlined_call_operand.vmem [shape: f32[8,1], index: 8, kind: input, shape index: {}]   ;;  %s1349_s9 = inlined_call_operand.hbm [shape: f32[2,8,8], index: 9, kind: output, shape index: {0}]   ;;  %s1350_s10 = inlined_call_operand.hbm [shape: f32[2,8,16], index: 10, kind: output, shape index: {1}]  }
   0x1   :  { %v911_v0 = vld [vmem:[%s1340_s0 + $0x4] sm:$0xf]  ;;  %971 = vmatprep.subr.mxu0 %v1117_v3  ;;  %973 = vmatprep.mubr.msk.f32.mxu0 %vm1118_vm0, %v1117_v3 }
   0x2   :  { %40 = vrot.lane.b32.xlu0 %v911_v0, %s1116_s15  ;;  %v1188_v2 = vand.u32 127, %v45_v1  ;;  %1063 = vset.pattern.permute.xlu1 %v1119_v4 }
   0x3   :  { %1062 = vset.pattern.permute.xlu0 %v1119_v4 }
   0x4   :  { %17 = vsyncpa [#allocation5], 0  ;;  %986 = vmatprep.subr.mxu1 %v1117_v3  ;;  %988 = vmatprep.mubr.msk.f32.mxu1 %vm1118_vm0, %v1117_v3  ;;  %vm43_vm1 = vcmask 130048   ;;  %v36_v5 = vld [vmem:[%s1340_s0] sm:$0xf]  ;;  %vm71_vm2 = vcmask 1043456  }
   0x5   :  { %v912_v7 = vld [vmem:[%s1341_s1 + $0x8] sm:$0xff]  ;;  %vm67_vm3 = vcmask 31744   ;;  %s1120_s20 = smov 1   ;;  %s1121_s0 = smov 127   ;;  %v1213_v11 = vshrl.u32 %v45_v1, 7  ;;  %vm55_vm6 = vcmask 7168  }
   0x6   :  { %47 = vrot.lane.b32.xlu0 %v1188_v2, %s1116_s15  ;;  %v50_v19 = vld [vmem:[%s1341_s1] sm:$0xff]  ;;  %vm225_vm8 = vcmask 252928   ;;  %v917_v24 = vld [vmem:[%s1341_s1 + $0x10] sm:$0xff]  ;;  %vm312_vm10 = vcmask 261120   ;;  %v920_v47 = vld [vmem:[%s1344_s4 + $0x8] sm:$0xff]  ;;  %vm352_vm11 = vcmask 64512  }
   0x7   :  { %v61_v12 = vsub.s32 0, %v1213_v11  ;;  %v323_v36 = vld [vmem:[%s1342_s2] sm:$0xff]  ;;  %v924_v53 = vld [vmem:[%s1344_s4 + $0x10] sm:$0xff] }
   0x8   :  { %v327_v39 = vld [vmem:[%s1343_s3] sm:$0xff] }
   0x9   :  { %v343_v49 = vld [vmem:[%s1344_s4] sm:$0xff] }
   0xa   :  { %v610_v57 = vld [vmem:[%s1347_s7] sm:$0xff] }
  0x74   :  { %v41_v6 = vpop.permute.xlu0 %40 }
  0x75   :  { %v44_v8 = vsel %vm43_vm1, %v36_v5, %v41_v6  ;;  %v696_v6 = vmul.u32 2, %v1188_v2 }
  0x76   :  { %52 = vrot.lane.b32.xlu1 %v44_v8, %s1120_s20  ;;  %972 = vmatpush3.msk.msra.mxu0 %vm71_vm2, %v44_v8 }
  0x77   :  { %974 = vmatmul.mubr.msk.f32.vlgmr.msra.gmra.mrb[0].mxu0 %vm67_vm3, %v912_v7  ;;  %976 = vmatprep.subr.mxu0 %v1117_v3  ;;  %vm697_vm12 = vcmp.eq.s32.totalorder %v1213_v11, %v696_v6 }
  0x78   :  { %978 = vmatprep.mubr.msk.f32.mxu0 %vm1118_vm0, %v1117_v3  ;;  %v48_v9 = vpop.permute.xlu0 %47 }
  0x79   :  { %v49_v10 = vsel %vm43_vm1, %v1188_v2, %v48_v9  ;;  %v693_v9 = vadd.s32 8, %v1213_v11 }
  0x7a   :  { %222 = vrot.lane.b32.xlu1 %v44_v8, %s1121_s0  ;;  %vm57_vm4 = vcmp.ge.s32.totalorder %v49_v10, 1  ;;  %vm227_vm5 = vcmp.lt.s32.totalorder %v49_v10, 15  ;;  %v611_v10 = vld [vmem:[%s1348_s8] sm:$0xff] }
  0x7b   :  { %v58_v13 = vsel %vm57_vm4, 1, %v1119_v4  ;;  %v228_v15 = vsel %vm227_vm5, 1, %v1119_v4  ;;  %v590_v4 = vld [vmem:[%s1345_s5] sm:$0xff]  ;;  %vm698_vm13 = vcmp.eq.s32.totalorder %v693_v9, %v696_v6  ;;  %s1124_s5 = smov 112  }
  0x7c   :  { %v1216_v14 = vrot.slane %v58_v13, %v61_v12  ;;  %v1220_v18 = vrot.slane %v228_v15, %v61_v12  ;;  %v1122_v12 = vmov 0.0|0.0   ;;  %v709_v13 = vadd.s32 1, %v696_v6  ;;  %vm1029_vm14 = vmpackc.low %vm698_vm13, %vm697_vm12 }
  0x7d   :  { %v694_v15 = vadd.s32 16, %v1213_v11 }
  0x7e   :  { %vm63_vm7 = vcmp.eq.s32.totalorder %v1216_v14, 1  ;;  %vm233_vm9 = vcmp.eq.s32.totalorder %v1220_v18, 1  ;;  %vm710_vm15 = vcmp.eq.s32.totalorder %v1213_v11, %v709_v13 }
  0x7f   :  { %vm712_vm5 = vcmp.eq.s32.totalorder %v694_v15, %v709_v13 }
  0xe8   :  { %v53_v16 = vpop.permute.xlu1 %52 }
  0xe9   :  { %v56_v17 = vsel %vm55_vm6, 0.0, %v53_v16  ;;  %v695_v16 = vadd.s32 24, %v1213_v11 }
  0xea   :  { %v64_v20 = vsel %vm63_vm7, %v56_v17, 0.0  ;;  %v1123_v17 = vmov 1.0|1.0  }
  0xeb   :  { %977 = vmatpush3.msk.msra.mxu0 %vm71_vm2, %v64_v20  ;;  %vm700_vm4 = vcmp.eq.s32.totalorder %v695_v16, %v696_v6 }
  0xec   :  { %v223_v21 = vpop.permute.xlu1 %222  ;;  %979 = vmatmul.mubr.msk.f32.vlgmr.msra.gmra.mrb[0].mxu0 %vm67_vm3, %v50_v19  ;;  %981 = vmatprep.subr.mxu0 %v1117_v3 }
  0xed   :  { %v226_v22 = vsel %vm225_vm8, %v223_v21, 0.0  ;;  %983 = vmatprep.mubr.msk.f32.mxu0 %vm1118_vm0, %v1117_v3 }
  0xee   :  { %v234_v23 = vsel %vm233_vm9, %v226_v22, 0.0 }
  0xef   :  { %982 = vmatpush3.msk.msra.mxu0 %vm71_vm2, %v234_v23 }
  0xf0   :  { %1001 = vmatprep.subr.mxu0 %v1117_v3 }
  0xf4   :  { %984 = vmatmul.mubr.msk.f32.vlgmr.msra.gmra.mrb[0].mxu0 %vm67_vm3, %v917_v24 }
  0xf5   :  { %1002 = vmatpush3.msk.msra.mxu0 %vm71_vm2, %v44_v8  ;;  %1003 = vmatprep.mubr.msk.f32.mxu0 %vm1118_vm0, %v1117_v3 }
  0xf6   :  { %1034 = vmatprep.subr.bf16.mxu0 %v1122_v12 }
  0xf8   :  { %1004 = vmatmul.mubr.msk.f32.vlgmr.msra.gmra.mrb[2].mxu0 %vm67_vm3, %v610_v57  ;;  %vm699_vm3 = vcmp.eq.s32.totalorder %v694_v15, %v696_v6 }
  0xf9   :  { %1025 = vmatprep.mubr.msk.f32.mxu0 %vm1118_vm0, %v1117_v3 }
 0x1c7   :  { %v307_v25 = vpop.f32.mrb[0].mxu0 }
 0x1c8   :  { %v985_v26 = vpop.f32.mrb[1].mxu0  ;;  %v313_v27 = vsel %vm312_vm10, %v307_v25, 0.0 }
 0x1c9   :  { %314 = vadd.xlane.f32.xlu0 %v313_v27 }
 0x1cb   :  { %v686_v14 = vpop.f32.mrb[2].mxu0 }
 0x1cc   :  { %v1005_v18 = vpop.f32.mrb[3].mxu0 }
 0x256   :  { %v315_v28 = vpop.xlane.xlu0 %314 }
 0x257   :  { %v316_v29 = vmul.f32 0.03125, %v315_v28 }
 0x259   :  { %v317_v30 = vsub.f32 %v307_v25, %v316_v29 }
 0x25b   :  { %v318_v31 = vmul.f32 %v317_v30, %v317_v30 }
 0x25d   :  { %v319_v32 = vsel %vm312_vm10, %v318_v31, 0.0 }
 0x25e   :  { %320 = vadd.xlane.f32.xlu1 %v319_v32 }
 0x2eb   :  { %v321_v33 = vpop.xlane.xlu1 %320 }
 0x2ec   :  { %v322_v34 = vmul.f32 0.03125, %v321_v33 }
 0x2ee   :  { %v324_v35 = vadd.f32 1e-05, %v322_v34 }
 0x2f0   :  { %1064 = vrsqrt.f32 %v324_v35 }
 0x2fa   :  { %v1065_v37 = vpop.eup %1064 }
 0x2fb   :  { %v326_v38 = vmul.f32 %v1065_v37, %v323_v36 }
 0x2fd   :  { %332 = vperm.xlu0 %1062, %v326_v38   ;;  %v328_v40 = vmul.f32 %v326_v38, %v316_v29 }
 0x2ff   :  { %v329_v41 = vsub.f32 %v327_v39, %v328_v40 }
 0x301   :  { %338 = vperm.xlu1 %1063, %v329_v41  }
 0x37c   :  { %v333_v42 = vpop.permute.xlu0 %332 }
 0x37d   :  { %v335_v43 = vmul.f32 %v333_v42, %v307_v25 }
 0x380   :  { %v339_v44 = vpop.permute.xlu1 %338 }
 0x381   :  { %v341_v45 = vadd.f32 %v339_v44, %v335_v43 }
 0x383   :  { %v342_v46 = vmax.f32 %v341_v45, 0.0 }
 0x385   :  { %345 = vrot.lane.b32.xlu1 %v342_v46, %s1120_s20  ;;  %987 = vmatpush3.msra.mxu1 %v342_v46 }
 0x386   :  { %989 = vmatmul.mubr.msk.f32.vlgmr.msra.gmra.mrb[0].mxu1 %vm352_vm11, %v920_v47  ;;  %991 = vmatprep.subr.mxu1 %v1117_v3 }
 0x387   :  { %993 = vmatprep.mubr.msk.f32.mxu1 %vm1118_vm0, %v1117_v3 }
 0x389   :  { %501 = vrot.lane.b32.xlu1 %v342_v46, %s1121_s0 }
 0x3f7   :  { %v346_v48 = vpop.permute.xlu1 %345 }
 0x3f8   :  { %v348_v50 = vsel %vm55_vm6, 0.0, %v346_v48  ;;  %vm1032_vm6 = vmpackc.low %vm700_vm4, %vm699_vm3 }
 0x3f9   :  { %992 = vmatpush3.msk.msra.mxu1 %vm63_vm7, %v348_v50  ;;  %vm713_vm7 = vcmp.eq.s32.totalorder %v695_v16, %v709_v13 }
 0x3fa   :  { %994 = vmatmul.mubr.msk.f32.vlgmr.msra.gmra.mrb[0].mxu1 %vm352_vm11, %v343_v49  ;;  %996 = vmatprep.subr.mxu1 %v1117_v3 }
 0x3fb   :  { %v502_v51 = vpop.permute.xlu1 %501  ;;  %998 = vmatprep.mubr.msk.f32.mxu1 %vm1118_vm0, %v1117_v3 }
 0x3fc   :  { %v504_v52 = vsel %vm225_vm8, %v502_v51, 0.0  ;;  %vm1038_vm8 = vmpackc.low %vm713_vm7, %vm712_vm5 }
 0x3fd   :  { %997 = vmatpush3.msk.msra.mxu1 %vm233_vm9, %v504_v52 }
 0x3fe   :  { %1028 = vmatprep.subr.bf16.mxu1 %v1122_v12 }
 0x402   :  { %999 = vmatmul.mubr.msk.f32.vlgmr.msra.gmra.mrb[0].mxu1 %vm352_vm11, %v924_v53 }
 0x403   :  { %1014 = vmatprep.mubr.msk.f32.mxu1 %vm1118_vm0, %v1117_v3  ;;  %v594_v3 = vld [vmem:[%s1346_s6] sm:$0xff]  ;;  %vm711_vm0 = vcmp.eq.s32.totalorder %v693_v9, %v709_v13  ;;  %1030 = vmatpush3.bf16.msk.msra.mxu1 %vm1029_vm14, %v1123_v17  ;;  %s1125_s6 = smov [#allocation4]  }
 0x404   :  { %vm1035_vm2 = vmpackc.low %vm711_vm0, %vm710_vm15  ;;  %1031 = vmatprep.subr.bf16.mxu1 %v1122_v12  ;;  %s896_s8 = sshll.u32 %s1125_s6, 4  ;;  %s897_s8 = int_to_ptr.vmem [resolvable:$true] %s896_s8 }
 0x405   :  { %1036 = vmatpush3.bf16.msk.msra.mxu0 %vm1035_vm2, %v1123_v17  ;;  %s1068_s18 = scalar_lea.vmem %s897_s8, 256  ;;  %p1073_p1 = scmp.lt.s32.totalorder %s897_s8, %s897_s8 }
 0x406   :  { %1037 = vmatprep.subr.bf16.mxu0 %v1122_v12  ;;  %p1069_p0 = scmp.ne.s32.totalorder %s897_s8, %s1068_s18  ;;  %p1074_p2 = scmp.lt.s32.totalorder %s1068_s18, %s1068_s18 }
 0x407   :  { %1033 = vmatpush3.bf16.msk.msra.mxu1 %vm1032_vm6, %v1123_v17 }
 0x408   :  { %p1075_p3 = por %p1074_p2, %p1073_p1 }
 0x409   :  { %1039 = vmatpush3.bf16.msk.msra.mxu0 %vm1038_vm8, %v1123_v17 }
 0x40a   :  { %p1076_p4 = pnand %p1075_p3, %p1069_p0 }
 0x4d5   :  { %v575_v54 = vpop.f32.mrb[0].mxu1 }
 0x4d6   :  { %v1000_v55 = vpop.f32.mrb[1].mxu1  ;;  %v580_v56 = vsel %vm312_vm10, %v575_v54, 0.0 }
 0x4d7   :  { %581 = vadd.xlane.f32.xlu1 %v580_v56 }
 0x564   :  { %v582_v58 = vpop.xlane.xlu1 %581 }
 0x565   :  { %v583_v59 = vmul.f32 0.03125, %v582_v58 }
 0x567   :  { %v584_v60 = vsub.f32 %v575_v54, %v583_v59 }
 0x569   :  { %v585_v61 = vmul.f32 %v584_v60, %v584_v60 }
 0x56b   :  { %v586_v62 = vsel %vm312_vm10, %v585_v61, 0.0 }
 0x56c   :  { %587 = vadd.xlane.f32.xlu0 %v586_v62 }
 0x5f9   :  { %v588_v63 = vpop.xlane.xlu0 %587 }
 0x5fa   :  { %v589_v0 = vmul.f32 0.03125, %v588_v63 }
 0x5fc   :  { %v591_v1 = vadd.f32 1e-05, %v589_v0 }
 0x5fe   :  { %1066 = vrsqrt.f32 %v591_v1 }
 0x608   :  { %v1067_v5 = vpop.eup %1066 }
 0x609   :  { %v593_v7 = vmul.f32 %v1067_v5, %v590_v4 }
 0x60b   :  { %599 = vperm.xlu1 %1063, %v593_v7   ;;  %v595_v8 = vmul.f32 %v593_v7, %v583_v59 }
 0x60d   :  { %v596_v2 = vsub.f32 %v594_v3, %v595_v8 }
 0x60f   :  { %614 = vperm.xlu1 %1063, %v611_v10   ;;  %605 = vperm.xlu0 %1062, %v596_v2  }
 0x68a   :  { %v600_v19 = vpop.permute.xlu1 %599 }
 0x68b   :  { %v602_v20 = vmul.f32 %v600_v19, %v575_v54 }
 0x68e   :  { %v615_v21 = vpop.permute.xlu1 %614  ;;  %v606_v22 = vpop.permute.xlu0 %605 }
 0x68f   :  { %v608_v23 = vadd.f32 %v606_v22, %v602_v20  ;;  %v687_v24 = vadd.f32 %v686_v14, %v615_v21 }
 0x691   :  { %v609_v11 = vmax.f32 %v608_v23, 0.0 }
 0x693   :  { %v690_v25 = vadd.f32 %v687_v24, %v609_v11 }
 0x695   :  { %866 = vst.msk [vmem:[#allocation4] sm:$0xff] %vm43_vm1, %v690_v25  ;;  %868 = vrot.lane.b32.xlu1 %v690_v25, %s1124_s5  ;;  %1015 = vmatmul.mubr.msk.f32.vlgmr.msra.gmra.mrb[2].mxu1 %vm312_vm10, %v690_v25 }
 0x696   :  { %1026 = vmatmul.mubr.msk.f32.vlgmr.msra.gmra.mrb[4].mxu0 %vm312_vm10, %v690_v25 }
 0x707   :  { %v869_v26 = vpop.permute.xlu1 %868 }
 0x708   :  { %872 = vst.msk [vmem:[#allocation4 + $0x8] sm:$0xff] %vm43_vm1, %v869_v26 }
 0x709   :  { %1079 = shalt.err (!%p1076_p4)
}
 0x70a   :  { %s1080_s0 = scalar_lea.hbm %s1350_s10, 256 }
 0x70b   :  { %p1081_p5 = scmp.ne.s32.totalorder %s1350_s10, %s1080_s0  ;;  %p1084_p6 = scmp.lt.u32.totalorder %s1080_s0, %s1350_s10 }
 0x70d   :  { %p1086_p7 = pnand %p1084_p6, %p1081_p5 }
 0x70f   :  { %1089 = shalt.err (!%p1086_p7)
}
 0x710   :  { %s1126_s1 = smov 128   ;;  %s1127_s25 = smov 8  }
 0x711   :  { %902 = dma.vmem_to_hbm [thread:$0]  %s897_s8, 256, %s1350_s10, [#allocation5], %s1126_s1, %s1126_s1, %s1127_s25  }
 0x712   :  { %s1128_s28 = smov 120   ;;  %s1129_s29 = smov [#allocation2]  }
 0x713   :  { %s884_s2 = sshll.u32 %s1129_s29, 4  ;;  %s885_s2 = int_to_ptr.vmem [resolvable:$true] %s884_s2 }
 0x714   :  { %s1090_s3 = scalar_lea.vmem %s885_s2, 256  ;;  %p1095_p9 = scmp.lt.s32.totalorder %s885_s2, %s885_s2 }
 0x715   :  { %p1091_p8 = scmp.ne.s32.totalorder %s885_s2, %s1090_s3  ;;  %p1096_p10 = scmp.lt.s32.totalorder %s1090_s3, %s1090_s3 }
 0x717   :  { %p1097_p11 = por %p1096_p10, %p1095_p9 }
 0x719   :  { %p1098_p12 = pnand %p1097_p11, %p1091_p8 }
 0x768   :  { %v791_v27 = vpop.f32.mrb[2].mxu1 }
 0x769   :  { %v861_v28 = vpop.f32.mrb[4].mxu0  ;;  %v1016_v29 = vpop.f32.mrb[3].mxu1 }
 0x76a   :  { %v865_v30 = vmax.f32 %v791_v27, %v861_v28  ;;  %v1027_v31 = vpop.f32.mrb[5].mxu0 }
 0x76c   :  { %867 = vst.msk [vmem:[#allocation2] sm:$0xff] %vm352_vm11, %v865_v30  ;;  %874 = vrot.lane.b32.xlu1 %v865_v30, %s1128_s28 }
 0x7de   :  { %v875_v32 = vpop.permute.xlu1 %874 }
 0x7df   :  { %878 = vst.msk [vmem:[#allocation2 + $0x8] sm:$0xff] %vm352_vm11, %v875_v32 }
 0x7e0   :  { %1101 = shalt.err (!%p1098_p12)
}
 0x7e1   :  { %s1102_s11 = scalar_lea.hbm %s1349_s9, 256 }
 0x7e2   :  { %p1103_p13 = scmp.ne.s32.totalorder %s1349_s9, %s1102_s11  ;;  %p1106_p0 = scmp.lt.u32.totalorder %s1102_s11, %s1349_s9 }
 0x7e4   :  { %p1108_p1 = pnand %p1106_p0, %p1103_p13 }
 0x7e6   :  { %1111 = shalt.err (!%p1108_p1)
}
 0x7e7   :  { %890 = dma.vmem_to_hbm [thread:$0]  %s885_s2, 256, %s1349_s9, [#allocation3], %s1126_s1, %s1126_s1, %s1127_s25  }
 0x7e8   :  { %1112 = dma.done.wait [#allocation3], 256  }
 0x7e9   :  { %1113 = vsyncadd [#allocation3], 4294967040 }
 0x7ea   :  { %1114 = dma.done.wait [#allocation5], 256  }
 0x7eb   :  { %1115 = vsyncadd [#allocation5], 4294967040 }
 0x7ec   :  { %909 = vsyncpa [#allocation3], 1 }
 0x7ed   :  { %910 = vsyncpa [#allocation5], 1 }

</bundles_post_ra>
